<compile_context>
chip_gen: v5e
topology: v5e:2x2
jax: 0.10.0
libtpu: 0.0.40
codegen_flags: <defaults>
</compile_context>

<pallas_src>
import functools

import jax
import jax.numpy as jnp
from jax.experimental import pallas as pl
from jax.experimental.pallas import tpu as pltpu

# Raised scoped-VMEM limit (default is 16 MiB on v5e / 32 MiB on v6e & v7x).
_VMEM_LIMIT = 48 * 1024 * 1024


# ----------------------------------------------------------------------------
# Row tiling helper (always yields a pipelined grid; pads rows if needed).
# ----------------------------------------------------------------------------
def _row_tiling(m, cap=512):
    for t in (cap, 256, 128):
        if t <= cap and m % t == 0:
            return t, m
    t = min(cap, 128)
    mp = ((m + t - 1) // t) * t
    return t, mp


def _pad_rows(x2d, mp):
    m = x2d.shape[0]
    if mp == m:
        return x2d
    return jnp.pad(x2d, ((0, mp - m), (0, 0)))


def _pick_tile(n, cap):
    for t in (cap, 256, 128):
        if t <= cap and n % t == 0:
            return t
    return n  # full extent — always a legal block shape


# ----------------------------------------------------------------------------
# Fused qkv projection: y = x @ w + b, split into lane-dense q / k / v (bf16).
# ----------------------------------------------------------------------------
def _qkv_kernel(x_ref, w_ref, b_ref, q_ref, k_ref, v_ref, *, c):
    acc = jnp.dot(x_ref[...].astype(jnp.bfloat16), w_ref[...],
                  preferred_element_type=jnp.float32) + b_ref[...]
    q_ref[...] = acc[:, :c].astype(q_ref.dtype)
    k_ref[...] = acc[:, c:2 * c].astype(k_ref.dtype)
    v_ref[...] = acc[:, 2 * c:].astype(v_ref.dtype)


def _qkv_linear(x2d, w_t, b, c, tm_cap=512):
    M, K = x2d.shape
    tm, Mp = _row_tiling(M, tm_cap)
    xp = _pad_rows(x2d, Mp)
    kern = functools.partial(_qkv_kernel, c=c)
    q, k, v = pl.pallas_call(
        kern,
        out_shape=tuple(jax.ShapeDtypeStruct((Mp, c), jnp.bfloat16)
                        for _ in range(3)),
        grid=(Mp // tm,),
        in_specs=[
            pl.BlockSpec((tm, K), lambda i: (i, 0)),
            pl.BlockSpec((K, 3 * c), lambda i: (0, 0)),   # resident weight
            pl.BlockSpec((1, 3 * c), lambda i: (0, 0)),
        ],
        out_specs=tuple(pl.BlockSpec((tm, c), lambda i: (i, 0))
                        for _ in range(3)),
        compiler_params=pltpu.CompilerParams(
            dimension_semantics=("parallel",),
            vmem_limit_bytes=_VMEM_LIMIT),
    )(xp, w_t.astype(jnp.bfloat16), b.reshape(1, 3 * c).astype(jnp.float32))
    if Mp != M:
        q, k, v = q[:M], k[:M], v[:M]
    return q, k, v


# ----------------------------------------------------------------------------
# Plain tiled linear: y = x @ w + b (bf16 MXU operands, f32 accumulation).
# ----------------------------------------------------------------------------
def _linear_kernel(x_ref, w_ref, b_ref, o_ref):
    acc = jnp.dot(x_ref[...].astype(jnp.bfloat16), w_ref[...],
                  preferred_element_type=jnp.float32)
    o_ref[...] = (acc + b_ref[...]).astype(o_ref.dtype)


def _linear(x2d, w_t, b, out_dtype, tm_cap=512):
    M, K = x2d.shape
    Nout = w_t.shape[1]
    tm, Mp = _row_tiling(M, tm_cap)
    xp = _pad_rows(x2d, Mp)
    out = pl.pallas_call(
        _linear_kernel,
        out_shape=jax.ShapeDtypeStruct((Mp, Nout), out_dtype),
        grid=(Mp // tm,),
        in_specs=[
            pl.BlockSpec((tm, K), lambda i: (i, 0)),
            pl.BlockSpec((K, Nout), lambda i: (0, 0)),    # resident weight
            pl.BlockSpec((1, Nout), lambda i: (0, 0)),
        ],
        out_specs=pl.BlockSpec((tm, Nout), lambda i: (i, 0)),
        compiler_params=pltpu.CompilerParams(
            dimension_semantics=("parallel",),
            vmem_limit_bytes=_VMEM_LIMIT),
    )(xp, w_t.astype(jnp.bfloat16), b.reshape(1, Nout).astype(jnp.float32))
    return out[:M] if Mp != M else out


# ----------------------------------------------------------------------------
# Flash-style attention kernel with fused decomposed rel-pos bias.
#   grid = (B, N//tq, N//tk); heads unrolled inside with per-head scratch.
# ----------------------------------------------------------------------------
def _attn_kernel(q_ref, k_ref, v_ref, rel_ref, e_ref, o_ref,
                 m_sc, l_sc, acc_sc, *, num_heads, head_dim, scale):
    kv_i = pl.program_id(2)

    @pl.when(kv_i == 0)
    def _():
        m_sc[...] = jnp.full(m_sc.shape, -jnp.inf, dtype=m_sc.dtype)
        l_sc[...] = jnp.zeros(l_sc.shape, dtype=l_sc.dtype)
        acc_sc[...] = jnp.zeros(acc_sc.shape, dtype=acc_sc.dtype)

    e = e_ref[...]                                       # (tk, H+W) bf16, exact 0/1

    for h in range(num_heads):                           # static unroll over heads
        lo = h * head_dim
        q = q_ref[0, :, lo:lo + head_dim]                # (tq, hd) bf16 (unscaled)
        k = k_ref[0, :, lo:lo + head_dim]                # (tk, hd) bf16
        v = v_ref[0, :, lo:lo + head_dim]                # (tk, hd) bf16
        rel = rel_ref[0, h]                              # (tq, H+W) bf16

        # Scores + rel-pos bias in ONE MXU matmul over an augmented contraction:
        #   [q*scale | rel_h|rel_w] (tq, hd+H+W)  .  [k | e] (tk, hd+H+W)
        lhs = jnp.concatenate([q * scale, rel], axis=-1)
        rhs = jnp.concatenate([k, e], axis=-1)
        s = jax.lax.dot_general(lhs, rhs, (((1,), (1,)), ((), ())),
                                preferred_element_type=jnp.float32)  # (tq, tk)

        # Online softmax update (all f32; exp on EUP).
        m_prev = m_sc[h]                                 # (tq, 1)
        m_new = jnp.maximum(m_prev, jnp.max(s, axis=-1, keepdims=True))
        alpha = jnp.exp(m_prev - m_new)
        p = jnp.exp(s - m_new)
        l_sc[h] = alpha * l_sc[h] + jnp.sum(p, axis=-1, keepdims=True)
        acc_sc[h] = alpha * acc_sc[h] + jnp.dot(
            p.astype(jnp.bfloat16), v, preferred_element_type=jnp.float32)
        m_sc[h] = m_new

    @pl.when(kv_i == pl.num_programs(2) - 1)
    def _():
        for h in range(num_heads):                       # per-head writeback, no concat
            lo = h * head_dim
            o_ref[0, :, lo:lo + head_dim] = (
                acc_sc[h] * pl.reciprocal(l_sc[h], approx=True)
            ).astype(o_ref.dtype)


# ----------------------------------------------------------------------------
# Module forward (glue in JAX, hot paths in Pallas)
# ----------------------------------------------------------------------------
def attention_forward(x, params, num_heads):
    w_qkv, b_qkv, w_proj, b_proj, rel_pos_h, rel_pos_w = params
    B, H, W, C = x.shape
    N = H * W
    hd = C // num_heads
    scale = hd ** (-0.5)

    # Fused qkv projection emitting separate lane-dense bf16 q/k/v (B, N, C):
    # no (B,N,3C) HBM tensor, no transpose pass, no split copies.
    q, k, v = _qkv_linear(x.reshape(B * N, C), w_qkv.T, b_qkv, C)
    q = q.reshape(B, N, C)
    k = k.reshape(B, N, C)
    v = v.reshape(B, N, C)

    # Relative-position tables (q_size == k_size == (H, W)).
    ch = jnp.arange(H)[:, None] - jnp.arange(H)[None, :] + (H - 1)
    Rh = rel_pos_h[ch]                                    # (H, H, hd)
    cw = jnp.arange(W)[:, None] - jnp.arange(W)[None, :] + (W - 1)
    Rw = rel_pos_w[cw]                                    # (W, W, hd)

    # head_dim contraction of the bias terms on the un-expanded tables (small
    # output: (B, nh, N, H+W)).  Uses unscaled q, exactly as the reference.
    # TODO(synk): fold this contraction into _attn_kernel (q already in VMEM).
    q_uns = q.reshape(B, H, W, num_heads, hd)
    rel_h = jnp.einsum("bhwnd,hkd->bnhwk", q_uns, Rh)     # (B, nh, H, W, H)
    rel_w = jnp.einsum("bhwnd,wkd->bnhwk", q_uns, Rw)     # (B, nh, H, W, W)
    rel_cat = jnp.concatenate(
        [rel_h.reshape(B, num_heads, N, H), rel_w.reshape(B, num_heads, N, W)],
        axis=-1).astype(jnp.bfloat16)                     # (B, nh, N, H+W)

    # 0/1 expansion matrix on the key side: row n2 selects h2=n2//W, w2=n2%W.
    n_idx = jnp.arange(N)
    eh = n_idx[:, None] // W == jnp.arange(H)[None, :]    # (N, H)
    ew = n_idx[:, None] % W == jnp.arange(W)[None, :]     # (N, W)
    e_mat = jnp.concatenate([eh, ew], axis=1).astype(jnp.bfloat16)  # (N, H+W)

    tq = _pick_tile(N, 256)
    tk = _pick_tile(N, 256)

    kern = functools.partial(_attn_kernel, num_heads=num_heads,
                             head_dim=hd, scale=scale)
    out = pl.pallas_call(
        kern,
        out_shape=jax.ShapeDtypeStruct((B, N, C), jnp.bfloat16),
        grid=(B, N // tq, N // tk),
        in_specs=[
            pl.BlockSpec((1, tq, C), lambda b, qi, ki: (b, qi, 0)),   # q tile
            pl.BlockSpec((1, tk, C), lambda b, qi, ki: (b, ki, 0)),   # k tile
            pl.BlockSpec((1, tk, C), lambda b, qi, ki: (b, ki, 0)),   # v tile
            pl.BlockSpec((1, num_heads, tq, H + W),
                         lambda b, qi, ki: (b, 0, qi, 0)),            # rel_cat
            pl.BlockSpec((tk, H + W), lambda b, qi, ki: (ki, 0)),     # e_mat
        ],
        out_specs=pl.BlockSpec((1, tq, C), lambda b, qi, ki: (b, qi, 0)),
        scratch_shapes=[
            pltpu.VMEM((num_heads, tq, 1), jnp.float32),   # running max
            pltpu.VMEM((num_heads, tq, 1), jnp.float32),   # running denom
            pltpu.VMEM((num_heads, tq, hd), jnp.float32),  # output accumulator
        ],
        compiler_params=pltpu.CompilerParams(
            dimension_semantics=("parallel", "parallel", "arbitrary"),
            vmem_limit_bytes=_VMEM_LIMIT),
    )(q, k, v, rel_cat, e_mat)

    # (B, N, C) bf16 is proj-ready (lane-dense); proj accumulates in f32.
    y = _linear(out.reshape(B * N, C), w_proj.T, b_proj, x.dtype)
    return y.reshape(B, H, W, C)


# ----------------------------------------------------------------------------
# Pure-JAX reference (mirrors the PyTorch forward exactly) for verification
# ----------------------------------------------------------------------------
def attention_ref(x, params, num_heads):
    w_qkv, b_qkv, w_proj, b_proj, rel_pos_h, rel_pos_w = params
    B, H, W, C = x.shape
    N = H * W
    hd = C // num_heads
    scale = hd ** (-0.5)

    qkv = (x.reshape(B, N, C) @ w_qkv.T + b_qkv).reshape(B, N, 3, num_heads, hd)
    qkv = qkv.transpose(2, 0, 3, 1, 4)
    q, k, v = qkv[0], qkv[1], qkv[2]

    ch = jnp.arange(H)[:, None] - jnp.arange(H)[None, :] + (H - 1)
    Rh = rel_pos_h[ch]
    cw = jnp.arange(W)[:, None] - jnp.arange(W)[None, :] + (W - 1)
    Rw = rel_pos_w[cw]

    outs = []
    for h in range(num_heads):
        qh, kh, vh = q[:, h], k[:, h], v[:, h]                    # (B, N, hd)
        attn = (qh * scale) @ kh.transpose(0, 2, 1)               # (B, N, N)
        rq = qh.reshape(B, H, W, hd)
        rel_h = jnp.einsum("bhwc,hkc->bhwk", rq, Rh)
        rel_w = jnp.einsum("bhwc,wkc->bhwk", rq, Rw)
        attn = (attn.reshape(B, H, W, H, W)
                + rel_h[:, :, :, :, None]
                + rel_w[:, :, :, None, :]).reshape(B, N, N)
        attn = jax.nn.softmax(attn, axis=-1)
        outs.append((attn @ vh).reshape(B, H, W, hd))
    out = jnp.concatenate(outs, axis=-1)
    return (out.reshape(B, N, C) @ w_proj.T + b_proj).reshape(B, H, W, C)


# ----------------------------------------------------------------------------
if __name__ == "__main__":
    B, H, W = 2, 8, 8
    dim, num_heads = 32, 4
    hd = dim // num_heads

    key = jax.random.PRNGKey(0)
    k_x, k_wq, k_bq, k_wp, k_bp, k_rh, k_rw = jax.random.split(key, 7)

    x = jax.random.normal(k_x, (B, H, W, dim), dtype=jnp.float32)

    # Deterministic synthetic parameters (module default zero-inits rel_pos;
    # we use small non-zero values to actually exercise the rel-pos path).
    w_qkv = jax.random.normal(k_wq, (3 * dim, dim), jnp.float32) * 0.05
    b_qkv = jax.random.normal(k_bq, (3 * dim,), jnp.float32) * 0.05
    w_proj = jax.random.normal(k_wp, (dim, dim), jnp.float32) * 0.05
    b_proj = jax.random.normal(k_bp, (dim,), jnp.float32) * 0.05
    rel_pos_h = jax.random.normal(k_rh, (2 * H - 1, hd), jnp.float32) * 0.02
    rel_pos_w = jax.random.normal(k_rw, (2 * W - 1, hd), jnp.float32) * 0.02
    params = (w_qkv, b_qkv, w_proj, b_proj, rel_pos_h, rel_pos_w)

    y = attention_forward(x, params, num_heads)
    y = jax.block_until_ready(y)

    y_ref = attention_ref(x, params, num_heads)
    assert y.shape == (B, H, W, dim)
    assert bool(jnp.all(jnp.isfinite(y)))
    assert bool(jnp.allclose(y, y_ref, atol=3e-2, rtol=3e-2)), \
        f"max abs diff {float(jnp.max(jnp.abs(y - y_ref)))}"

    print("KERNEL_OK")
</pallas_src>

<mosaic_0001>
module attributes {stable_mosaic.version = 11 : i64} {
  func.func @_qkv_kernel(%arg0: i32, %arg1: memref<128x32xf32, #tpu.memory_space<vmem>>, %arg2: memref<32x96xbf16, #tpu.memory_space<vmem>>, %arg3: memref<1x96xf32, #tpu.memory_space<vmem>>, %arg4: memref<128x32xbf16, #tpu.memory_space<vmem>>, %arg5: memref<128x32xbf16, #tpu.memory_space<vmem>>, %arg6: memref<128x32xbf16, #tpu.memory_space<vmem>>) attributes {dimension_semantics = [#tpu.dimension_semantics<parallel>], iteration_bounds = array<i64: 1>, scalar_prefetch = 0 : i64, scratch_operands = 0 : i64, tpu.core_type = #tpu.core_type<tc>, window_params = [{transform_indices = @transform_0, window_bounds = array<i64: 128, 32>}, {pipeline_mode = #tpu.pipeline_mode<synchronous>, transform_indices = @transform_1, window_bounds = array<i64: 32, 96>}, {pipeline_mode = #tpu.pipeline_mode<synchronous>, transform_indices = @transform_2, window_bounds = array<i64: 1, 96>}, {transform_indices = @transform_3, window_bounds = array<i64: 128, 32>}, {transform_indices = @transform_4, window_bounds = array<i64: 128, 32>}, {transform_indices = @transform_5, window_bounds = array<i64: 128, 32>}]} {
    %c0 = arith.constant 0 : index
    %c0_0 = arith.constant 0 : index
    %0 = vector.load %arg1[%c0, %c0_0] : memref<128x32xf32, #tpu.memory_space<vmem>>, vector<128x32xf32>
    %1 = arith.truncf %0 : vector<128x32xf32> to vector<128x32xbf16>
    %c0_1 = arith.constant 0 : index
    %c0_2 = arith.constant 0 : index
    %2 = vector.load %arg2[%c0_1, %c0_2] : memref<32x96xbf16, #tpu.memory_space<vmem>>, vector<32x96xbf16>
    %cst = arith.constant dense<0.000000e+00> : vector<128x96xf32>
    %3 = tpu.matmul %1, %2, %cst {dimension_numbers = #tpu.dot_dimension_numbers<[1], [0], [0], [1], [0, 0, 1, 1], [], []>} : vector<128x32xbf16>, vector<32x96xbf16>, vector<128x96xf32> -> vector<128x96xf32>
    %c0_3 = arith.constant 0 : index
    %c0_4 = arith.constant 0 : index
    %4 = vector.load %arg3[%c0_3, %c0_4] : memref<1x96xf32, #tpu.memory_space<vmem>>, vector<1x96xf32>
    %5 = vector.broadcast %4 : vector<1x96xf32> to vector<128x96xf32>
    %6 = arith.addf %3, %5 : vector<128x96xf32>
    %7 = vector.extract_strided_slice %6 {offsets = [0, 0], sizes = [128, 32], strides = [1, 1]} : vector<128x96xf32> to vector<128x32xf32>
    %8 = arith.truncf %7 : vector<128x32xf32> to vector<128x32xbf16>
    %c0_5 = arith.constant 0 : index
    %c0_6 = arith.constant 0 : index
    %9 = vector.load %arg4[%c0_5, %c0_6] : memref<128x32xbf16, #tpu.memory_space<vmem>>, vector<128x32xbf16>
    tpu.vector_store %arg4[%c0_5, %c0_6], %8 {strides = array<i32>} : memref<128x32xbf16, #tpu.memory_space<vmem>>, vector<128x32xbf16>,
    %10 = vector.extract_strided_slice %6 {offsets = [0, 32], sizes = [128, 32], strides = [1, 1]} : vector<128x96xf32> to vector<128x32xf32>
    %11 = arith.truncf %10 : vector<128x32xf32> to vector<128x32xbf16>
    %c0_7 = arith.constant 0 : index
    %c0_8 = arith.constant 0 : index
    %12 = vector.load %arg5[%c0_7, %c0_8] : memref<128x32xbf16, #tpu.memory_space<vmem>>, vector<128x32xbf16>
    tpu.vector_store %arg5[%c0_7, %c0_8], %11 {strides = array<i32>} : memref<128x32xbf16, #tpu.memory_space<vmem>>, vector<128x32xbf16>,
    %13 = vector.extract_strided_slice %6 {offsets = [0, 64], sizes = [128, 32], strides = [1, 1]} : vector<128x96xf32> to vector<128x32xf32>
    %14 = arith.truncf %13 : vector<128x32xf32> to vector<128x32xbf16>
    %c0_9 = arith.constant 0 : index
    %c0_10 = arith.constant 0 : index
    %15 = vector.load %arg6[%c0_9, %c0_10] : memref<128x32xbf16, #tpu.memory_space<vmem>>, vector<128x32xbf16>
    tpu.vector_store %arg6[%c0_9, %c0_10], %14 {strides = array<i32>} : memref<128x32xbf16, #tpu.memory_space<vmem>>, vector<128x32xbf16>,
    return
  }
  func.func @transform_0(%arg0: i32) -> (i32, i32) {
    %c0_i32 = arith.constant 0 : i32
    %c0_i32_0 = arith.constant 0 : i32
    return %arg0, %c0_i32 : i32, i32
  }
  func.func @transform_1(%arg0: i32) -> (i32, i32) {
    %c0_i32 = arith.constant 0 : i32
    %c0_i32_0 = arith.constant 0 : i32
    %c0_i32_1 = arith.constant 0 : i32
    return %c0_i32, %c0_i32_0 : i32, i32
  }
  func.func @transform_2(%arg0: i32) -> (i32, i32) {
    %c0_i32 = arith.constant 0 : i32
    %c0_i32_0 = arith.constant 0 : i32
    %c0_i32_1 = arith.constant 0 : i32
    return %c0_i32, %c0_i32_0 : i32, i32
  }
  func.func @transform_3(%arg0: i32) -> (i32, i32) {
    %c0_i32 = arith.constant 0 : i32
    %c0_i32_0 = arith.constant 0 : i32
    return %arg0, %c0_i32 : i32, i32
  }
  func.func @transform_4(%arg0: i32) -> (i32, i32) {
    %c0_i32 = arith.constant 0 : i32
    %c0_i32_0 = arith.constant 0 : i32
    return %arg0, %c0_i32 : i32, i32
  }
  func.func @transform_5(%arg0: i32) -> (i32, i32) {
    %c0_i32 = arith.constant 0 : i32
    %c0_i32_0 = arith.constant 0 : i32
    return %arg0, %c0_i32 : i32, i32
  }
}

</mosaic_0001>

<bundles_post_ra>
// kernel: tpu_custom_call.1
= control target key start
LH: loop header
LB: loop body
LE: loop exit
PB: predicated region body
PF: predicated region fallthrough
CT: control target
= control target key end

     0   :  { %vm62_vm0 = vcmask 261120   ;;  %vm152_vm1 = vcmask 257024   ;;  %s353_s6 = smov 64   ;;  %s691_s1 = inlined_call_operand.vmem [shape: bf16[32,96], index: 1, kind: input, shape index: {}]   ;;  %s692_s0 = inlined_call_operand.vmem [shape: f32[128,32], index: 0, kind: input, shape index: {}]   ;;  %s693_s2 = inlined_call_operand.vmem [shape: f32[1,96], index: 2, kind: input, shape index: {}]   ;;  %s694_s3 = inlined_call_operand.vmem [shape: bf16[128,32], index: 3, kind: output, shape index: {0}]   ;;  %s695_s4 = inlined_call_operand.vmem [shape: bf16[128,32], index: 4, kind: output, shape index: {1}]   ;;  %s696_s5 = inlined_call_operand.vmem [shape: bf16[128,32], index: 5, kind: output, shape index: {2}]  }
   0x1   :  { %v342_v0 = vld [vmem:[%s691_s1 + $0x8] sm:$0xff]  ;;  %v341_v1 = vld [vmem:[%s691_s1] sm:$0xff]  ;;  %v20_v14 = vld [vmem:[%s692_s0 + $0x10] sm:$0xff]  ;;  %s352_s1 = smov 96  }
   0x2   :  { %v18_v2 = vld [vmem:[%s692_s0] sm:$0xff]  ;;  %v19_v3 = vld [vmem:[%s692_s0 + $0x8] sm:$0xff]  ;;  %93 = vmatpush.bf16.msra.mxu0 %v342_v0  ;;  %343 = vmatpush.bf16.msra.mxu1 %v342_v0  ;;  %v21_v15 = vld [vmem:[%s692_s0 + $0x18] sm:$0xff] }
   0x3   :  { %v22_v4 = vld [vmem:[%s692_s0 + $0x20] sm:$0xff]  ;;  %v23_v5 = vld [vmem:[%s692_s0 + $0x28] sm:$0xff]  ;;  %345 = vmatpush.bf16.msra.mxu3 %v342_v0  ;;  %344 = vmatpush.bf16.msra.mxu2 %v342_v0  ;;  %v34_v10 = vpack.c.bf16 %v19_v3, %v18_v2  ;;  %v24_v16 = vld [vmem:[%s692_s0 + $0x30] sm:$0xff]  ;;  %v35_v22 = vpack.c.bf16 %v21_v15, %v20_v14 }
   0x4   :  { %v30_v6 = vld [vmem:[%s692_s0 + $0x60] sm:$0xff]  ;;  %v31_v7 = vld [vmem:[%s692_s0 + $0x68] sm:$0xff]  ;;  %v36_v11 = vpack.c.bf16 %v23_v5, %v22_v4  ;;  %v25_v17 = vld [vmem:[%s692_s0 + $0x38] sm:$0xff] }
   0x5   :  { %v26_v8 = vld [vmem:[%s692_s0 + $0x40] sm:$0xff]  ;;  %v27_v9 = vld [vmem:[%s692_s0 + $0x48] sm:$0xff]  ;;  %v40_v12 = vpack.c.bf16 %v31_v7, %v30_v6  ;;  %v28_v18 = vld [vmem:[%s692_s0 + $0x50] sm:$0xff]  ;;  %v37_v23 = vpack.c.bf16 %v25_v17, %v24_v16 }
   0x6   :  { %94 = vmatpush.bf16.msra.mxu0 %v341_v1  ;;  %346 = vmatpush.bf16.msra.mxu1 %v341_v1  ;;  %v38_v13 = vpack.c.bf16 %v27_v9, %v26_v8  ;;  %v29_v19 = vld [vmem:[%s692_s0 + $0x58] sm:$0xff]  ;;  %v32_v20 = vld [vmem:[%s692_s0 + $0x70] sm:$0xff]  ;;  %v449_v26 = vld [vmem:[%s693_s2] ss:$0 sm:$0xff] }
   0x7   :  { %348 = vmatpush.bf16.msra.mxu3 %v341_v1  ;;  %347 = vmatpush.bf16.msra.mxu2 %v341_v1  ;;  %v33_v21 = vld [vmem:[%s692_s0 + $0x78] sm:$0xff]  ;;  %v39_v24 = vpack.c.bf16 %v29_v19, %v28_v18 }
   0x8   :  { %v41_v25 = vpack.c.bf16 %v33_v21, %v32_v20 }
   0x9   :  { %333 = vmatmul.msk.bf16.vlgmr.msra.gmra.mxu0 %vm62_vm0, %v34_v10  ;;  %335 = vmatmul.msk.bf16.vlgmr.msra.gmra.mxu1 %vm62_vm0, %v36_v11 }
   0xa   :  { %339 = vmatmul.msk.bf16.vlgmr.msra.gmra.mxu3 %vm62_vm0, %v40_v12  ;;  %337 = vmatmul.msk.bf16.vlgmr.msra.gmra.mxu2 %vm62_vm0, %v38_v13 }
  0x19   :  { %334 = vmatmul.msk.bf16.gmra.mxu0 %vm62_vm0, %v35_v22  ;;  %336 = vmatmul.msk.bf16.gmra.mxu1 %vm62_vm0, %v37_v23 }
  0x1a   :  { %338 = vmatmul.msk.bf16.gmra.mxu2 %vm62_vm0, %v39_v24  ;;  %340 = vmatmul.msk.bf16.gmra.mxu3 %vm62_vm0, %v41_v25 }
  0x86   :  { %v96_v27 = vpop.f32.mrf.mxu0  ;;  %v106_v28 = vpop.f32.mrf.mxu1 }
  0x87   :  { %v97_v29 = vadd.f32 %v449_v26, %v96_v27  ;;  %v107_v30 = vadd.f32 %v449_v26, %v106_v28 }
  0x89   :  { %v136_v31 = vpack.c.bf16 %v97_v29, %v97_v29  ;;  %v140_v32 = vpack.c.bf16 %v107_v30, %v107_v30 }
  0x8b   :  { %153 = vst.msk [vmem:[%s694_s3] sm:$0xf] %vm152_vm1, %v136_v31  ;;  %193 = vrot.lane.b32.xlu2 %v140_v32, %s352_s1  ;;  %249 = vrot.lane.b32.xlu1 %v136_v31, %s353_s6 }
  0x8c   :  { %157 = vst.msk [vmem:[%s694_s3 + $0x10] sm:$0xf] %vm152_vm1, %v140_v32  ;;  %185 = vrot.lane.b32.xlu0 %v136_v31, %s352_s1 }
  0x8d   :  { %v126_v33 = vpop.f32.mrf.mxu3  ;;  %v116_v34 = vpop.f32.mrf.mxu2 }
  0x8e   :  { %v127_v35 = vadd.f32 %v449_v26, %v126_v33  ;;  %v98_v36 = vpop.f32.mrf.mxu0  ;;  %v117_v37 = vadd.f32 %v449_v26, %v116_v34  ;;  %v108_v38 = vpop.f32.mrf.mxu1 }
  0x8f   :  { %v99_v39 = vadd.f32 %v449_v26, %v98_v36  ;;  %v109_v40 = vadd.f32 %v449_v26, %v108_v38 }
  0x90   :  { %v148_v41 = vpack.c.bf16 %v127_v35, %v127_v35  ;;  %v144_v42 = vpack.c.bf16 %v117_v37, %v117_v37 }
  0x91   :  { %v137_v43 = vpack.c.bf16 %v99_v39, %v99_v39  ;;  %v141_v44 = vpack.c.bf16 %v109_v40, %v109_v40 }
  0x92   :  { %165 = vst.msk [vmem:[%s694_s3 + $0x30] sm:$0xf] %vm152_vm1, %v148_v41 }
  0x93   :  { %154 = vst.msk [vmem:[%s694_s3 + $0x4] sm:$0xf] %vm152_vm1, %v137_v43  ;;  %257 = vrot.lane.b32.xlu2 %v140_v32, %s353_s6  ;;  %273 = vrot.lane.b32.xlu1 %v148_v41, %s353_s6 }
  0x94   :  { %161 = vst.msk [vmem:[%s694_s3 + $0x20] sm:$0xf] %vm152_vm1, %v144_v42  ;;  %209 = vrot.lane.b32.xlu0 %v148_v41, %s352_s1 }
  0x95   :  { %v128_v45 = vpop.f32.mrf.mxu3  ;;  %v118_v46 = vpop.f32.mrf.mxu2  ;;  %158 = vst.msk [vmem:[%s694_s3 + $0x14] sm:$0xf] %vm152_vm1, %v141_v44 }
  0x96   :  { %v129_v47 = vadd.f32 %v449_v26, %v128_v45  ;;  %v119_v48 = vadd.f32 %v449_v26, %v118_v46  ;;  %v101_v49 = vpop.f32.mrf.mxu0  ;;  %v111_v50 = vpop.f32.mrf.mxu1 }
  0x97   :  { %v102_v51 = vadd.f32 %v449_v26, %v101_v49  ;;  %v112_v52 = vadd.f32 %v449_v26, %v111_v50 }
  0x98   :  { %v149_v53 = vpack.c.bf16 %v129_v47, %v129_v47  ;;  %v145_v54 = vpack.c.bf16 %v119_v48, %v119_v48 }
  0x99   :  { %v138_v55 = vpack.c.bf16 %v102_v51, %v102_v51  ;;  %v142_v56 = vpack.c.bf16 %v112_v52, %v112_v52 }
  0x9a   :  { %166 = vst.msk [vmem:[%s694_s3 + $0x34] sm:$0xf] %vm152_vm1, %v149_v53 }
  0x9b   :  { %162 = vst.msk [vmem:[%s694_s3 + $0x24] sm:$0xf] %vm152_vm1, %v145_v54  ;;  %201 = vrot.lane.b32.xlu2 %v144_v42, %s352_s1  ;;  %211 = vrot.lane.b32.xlu1 %v149_v53, %s352_s1 }
  0x9c   :  { %265 = vrot.lane.b32.xlu0 %v144_v42, %s353_s6  ;;  %155 = vst.msk [vmem:[%s694_s3 + $0x8] sm:$0xf] %vm152_vm1, %v138_v55 }
  0x9d   :  { %159 = vst.msk [vmem:[%s694_s3 + $0x18] sm:$0xf] %vm152_vm1, %v142_v56  ;;  %v121_v57 = vpop.f32.mrf.mxu2  ;;  %v131_v58 = vpop.f32.mrf.mxu3 }
  0x9e   :  { %v103_v59 = vpop.f32.mrf.mxu0  ;;  %v113_v60 = vpop.f32.mrf.mxu1  ;;  %v122_v61 = vadd.f32 %v449_v26, %v121_v57  ;;  %v132_v0 = vadd.f32 %v449_v26, %v131_v58 }
  0x9f   :  { %v104_v62 = vadd.f32 %v449_v26, %v103_v59  ;;  %v114_v63 = vadd.f32 %v449_v26, %v113_v60 }
  0xa0   :  { %v146_v1 = vpack.c.bf16 %v122_v61, %v122_v61  ;;  %v150_v4 = vpack.c.bf16 %v132_v0, %v132_v0 }
  0xa1   :  { %v139_v2 = vpack.c.bf16 %v104_v62, %v104_v62  ;;  %v143_v3 = vpack.c.bf16 %v114_v63, %v114_v63 }
  0xa2   :  { %163 = vst.msk [vmem:[%s694_s3 + $0x28] sm:$0xf] %vm152_vm1, %v146_v1 }
  0xa3   :  { %195 = vrot.lane.b32.xlu2 %v141_v44, %s352_s1  ;;  %267 = vrot.lane.b32.xlu1 %v145_v54, %s353_s6  ;;  %156 = vst.msk [vmem:[%s694_s3 + $0xc] sm:$0xf] %vm152_vm1, %v139_v2 }
  0xa4   :  { %187 = vrot.lane.b32.xlu0 %v137_v43, %s352_s1  ;;  %160 = vst.msk [vmem:[%s694_s3 + $0x1c] sm:$0xf] %vm152_vm1, %v143_v3 }
  0xa5   :  { %167 = vst.msk [vmem:[%s694_s3 + $0x38] sm:$0xf] %vm152_vm1, %v150_v4  ;;  %v123_v5 = vpop.f32.mrf.mxu2  ;;  %v133_v6 = vpop.f32.mrf.mxu3 }
  0xa6   :  { %v124_v7 = vadd.f32 %v449_v26, %v123_v5  ;;  %v134_v8 = vadd.f32 %v449_v26, %v133_v6 }
  0xa8   :  { %v147_v9 = vpack.c.bf16 %v124_v7, %v124_v7  ;;  %v151_v10 = vpack.c.bf16 %v134_v8, %v134_v8 }
  0xaa   :  { %164 = vst.msk [vmem:[%s694_s3 + $0x2c] sm:$0xf] %vm152_vm1, %v147_v9 }
  0xab   :  { %251 = vrot.lane.b32.xlu2 %v137_v43, %s353_s6  ;;  %189 = vrot.lane.b32.xlu1 %v138_v55, %s352_s1  ;;  %168 = vst.msk [vmem:[%s694_s3 + $0x3c] sm:$0xf] %vm152_vm1, %v151_v10 }
  0xac   :  { %259 = vrot.lane.b32.xlu0 %v141_v44, %s353_s6 }
  0xb3   :  { %213 = vrot.lane.b32.xlu2 %v150_v4, %s352_s1  ;;  %261 = vrot.lane.b32.xlu1 %v142_v56, %s353_s6 }
  0xb4   :  { %203 = vrot.lane.b32.xlu0 %v145_v54, %s352_s1 }
  0xbb   :  { %269 = vrot.lane.b32.xlu2 %v146_v1, %s353_s6  ;;  %205 = vrot.lane.b32.xlu1 %v146_v1, %s352_s1 }
  0xbc   :  { %197 = vrot.lane.b32.xlu0 %v142_v56, %s352_s1 }
  0xc3   :  { %263 = vrot.lane.b32.xlu2 %v143_v3, %s353_s6  ;;  %191 = vrot.lane.b32.xlu1 %v139_v2, %s352_s1 }
  0xc4   :  { %253 = vrot.lane.b32.xlu0 %v138_v55, %s353_s6 }
  0xcb   :  { %207 = vrot.lane.b32.xlu2 %v147_v9, %s352_s1  ;;  %199 = vrot.lane.b32.xlu1 %v143_v3, %s352_s1 }
  0xcc   :  { %215 = vrot.lane.b32.xlu0 %v151_v10, %s352_s1 }
  0xd3   :  { %275 = vrot.lane.b32.xlu2 %v149_v53, %s353_s6  ;;  %255 = vrot.lane.b32.xlu1 %v139_v2, %s353_s6 }
  0xd4   :  { %271 = vrot.lane.b32.xlu0 %v147_v9, %s353_s6 }
  0xdb   :  { %279 = vrot.lane.b32.xlu1 %v151_v10, %s353_s6 }
  0xdc   :  { %277 = vrot.lane.b32.xlu0 %v150_v4, %s353_s6 }
  0xe5   :  { %v194_v11 = vpop.permute.xlu2 %193 }
  0xe6   :  { %237 = vst.msk [vmem:[%s695_s4 + $0x10] sm:$0xf] %vm152_vm1, %v194_v11 }
  0xed   :  { %v258_v12 = vpop.permute.xlu2 %257 }
  0xee   :  { %301 = vst.msk [vmem:[%s696_s5 + $0x10] sm:$0xf] %vm152_vm1, %v258_v12 }
  0xf5   :  { %v202_v13 = vpop.permute.xlu2 %201 }
  0xf6   :  { %241 = vst.msk [vmem:[%s695_s4 + $0x20] sm:$0xf] %vm152_vm1, %v202_v13 }
  0xfd   :  { %v196_v14 = vpop.permute.xlu2 %195  ;;  %v250_v15 = vpop.permute.xlu1 %249 }
  0xfe   :  { %238 = vst.msk [vmem:[%s695_s4 + $0x14] sm:$0xf] %vm152_vm1, %v196_v14  ;;  %v186_v16 = vpop.permute.xlu0 %185 }
  0xff   :  { %297 = vst.msk [vmem:[%s696_s5] sm:$0xf] %vm152_vm1, %v250_v15 }
 0x100   :  { %233 = vst.msk [vmem:[%s695_s4] sm:$0xf] %vm152_vm1, %v186_v16 }
 0x105   :  { %v252_v17 = vpop.permute.xlu2 %251  ;;  %v274_v18 = vpop.permute.xlu1 %273 }
 0x106   :  { %298 = vst.msk [vmem:[%s696_s5 + $0x4] sm:$0xf] %vm152_vm1, %v252_v17  ;;  %v210_v19 = vpop.permute.xlu0 %209 }
 0x107   :  { %309 = vst.msk [vmem:[%s696_s5 + $0x30] sm:$0xf] %vm152_vm1, %v274_v18 }
 0x108   :  { %245 = vst.msk [vmem:[%s695_s4 + $0x30] sm:$0xf] %vm152_vm1, %v210_v19 }
 0x10d   :  { %v214_v20 = vpop.permute.xlu2 %213  ;;  %v212_v21 = vpop.permute.xlu1 %211 }
 0x10e   :  { %247 = vst.msk [vmem:[%s695_s4 + $0x38] sm:$0xf] %vm152_vm1, %v214_v20  ;;  %v266_v22 = vpop.permute.xlu0 %265 }
 0x10f   :  { %246 = vst.msk [vmem:[%s695_s4 + $0x34] sm:$0xf] %vm152_vm1, %v212_v21 }
 0x110   :  { %305 = vst.msk [vmem:[%s696_s5 + $0x20] sm:$0xf] %vm152_vm1, %v266_v22 }
 0x115   :  { %v270_v23 = vpop.permute.xlu2 %269  ;;  %v268_v24 = vpop.permute.xlu1 %267 }
 0x116   :  { %307 = vst.msk [vmem:[%s696_s5 + $0x28] sm:$0xf] %vm152_vm1, %v270_v23  ;;  %v188_v25 = vpop.permute.xlu0 %187 }
 0x117   :  { %306 = vst.msk [vmem:[%s696_s5 + $0x24] sm:$0xf] %vm152_vm1, %v268_v24 }
 0x118   :  { %234 = vst.msk [vmem:[%s695_s4 + $0x4] sm:$0xf] %vm152_vm1, %v188_v25 }
 0x11d   :  { %v264_v26 = vpop.permute.xlu2 %263  ;;  %v190_v27 = vpop.permute.xlu1 %189 }
 0x11e   :  { %304 = vst.msk [vmem:[%s696_s5 + $0x1c] sm:$0xf] %vm152_vm1, %v264_v26  ;;  %v260_v28 = vpop.permute.xlu0 %259 }
 0x11f   :  { %235 = vst.msk [vmem:[%s695_s4 + $0x8] sm:$0xf] %vm152_vm1, %v190_v27 }
 0x120   :  { %302 = vst.msk [vmem:[%s696_s5 + $0x14] sm:$0xf] %vm152_vm1, %v260_v28 }
 0x125   :  { %v208_v29 = vpop.permute.xlu2 %207  ;;  %v262_v30 = vpop.permute.xlu1 %261 }
 0x126   :  { %244 = vst.msk [vmem:[%s695_s4 + $0x2c] sm:$0xf] %vm152_vm1, %v208_v29  ;;  %v204_v31 = vpop.permute.xlu0 %203 }
 0x127   :  { %303 = vst.msk [vmem:[%s696_s5 + $0x18] sm:$0xf] %vm152_vm1, %v262_v30 }
 0x128   :  { %242 = vst.msk [vmem:[%s695_s4 + $0x24] sm:$0xf] %vm152_vm1, %v204_v31 }
 0x12d   :  { %v276_v32 = vpop.permute.xlu2 %275  ;;  %v206_v33 = vpop.permute.xlu1 %205 }
 0x12e   :  { %310 = vst.msk [vmem:[%s696_s5 + $0x34] sm:$0xf] %vm152_vm1, %v276_v32  ;;  %v198_v34 = vpop.permute.xlu0 %197 }
 0x12f   :  { %243 = vst.msk [vmem:[%s695_s4 + $0x28] sm:$0xf] %vm152_vm1, %v206_v33 }
 0x130   :  { %239 = vst.msk [vmem:[%s695_s4 + $0x18] sm:$0xf] %vm152_vm1, %v198_v34 }
 0x135   :  { %v192_v35 = vpop.permute.xlu1 %191 }
 0x136   :  { %236 = vst.msk [vmem:[%s695_s4 + $0xc] sm:$0xf] %vm152_vm1, %v192_v35  ;;  %v254_v36 = vpop.permute.xlu0 %253 }
 0x137   :  { %299 = vst.msk [vmem:[%s696_s5 + $0x8] sm:$0xf] %vm152_vm1, %v254_v36 }
 0x13d   :  { %v200_v37 = vpop.permute.xlu1 %199 }
 0x13e   :  { %240 = vst.msk [vmem:[%s695_s4 + $0x1c] sm:$0xf] %vm152_vm1, %v200_v37  ;;  %v216_v38 = vpop.permute.xlu0 %215 }
 0x13f   :  { %248 = vst.msk [vmem:[%s695_s4 + $0x3c] sm:$0xf] %vm152_vm1, %v216_v38 }
 0x145   :  { %v256_v39 = vpop.permute.xlu1 %255 }
 0x146   :  { %300 = vst.msk [vmem:[%s696_s5 + $0xc] sm:$0xf] %vm152_vm1, %v256_v39  ;;  %v272_v40 = vpop.permute.xlu0 %271 }
 0x147   :  { %308 = vst.msk [vmem:[%s696_s5 + $0x2c] sm:$0xf] %vm152_vm1, %v272_v40 }
 0x14d   :  { %v280_v41 = vpop.permute.xlu1 %279 }
 0x14e   :  { %312 = vst.msk [vmem:[%s696_s5 + $0x3c] sm:$0xf] %vm152_vm1, %v280_v41  ;;  %v278_v42 = vpop.permute.xlu0 %277 }
 0x14f   :  { %311 = vst.msk [vmem:[%s696_s5 + $0x38] sm:$0xf] %vm152_vm1, %v278_v42 }

</bundles_post_ra>
